<compile_context>
chip_gen: v6e
topology: v6e:2x2x1
jax: 0.10.0
libtpu: 0.0.40
codegen_flags: <defaults>
</compile_context>

<pallas_src>
import functools
import math

import jax
import jax.numpy as jnp
from jax.experimental import pallas as pl
from jax.experimental.pallas import tpu as pltpu


def _round_up(x: int, m: int) -> int:
    return ((x + m - 1) // m) * m


def _pe_kernel(tbl_ref, t_ref, out_ref, *, groups: int):
    # tbl_ref: (G+1, W)  rows 0..G-1 = lane-masked freq*max_len, row G = phase
    # t_ref:   (tm, G)   G packed time values per output row
    # out_ref: (tm, W)   W = G * d_model
    pos = t_ref[...]                                       # (tm, G) f32
    angle = pos[:, 0:1] * tbl_ref[0:1, :]                  # (tm, W)
    for g in range(1, groups):                             # tiny static unroll (VPU FMAs)
        angle = angle + pos[:, g:g + 1] * tbl_ref[g:g + 1, :]
    angle = angle + tbl_ref[groups:groups + 1, :]          # + phase (pi/2 on odd lanes)
    out_ref[...] = jnp.sin(angle).astype(out_ref.dtype)    # one wide sin, one wide store
    # dropout(p=0.0) is the identity -> nothing to do.


def positional_encoding(t, d_model: int, max_len: int = 5000,
                        out_dtype=jnp.float32, block_rows=None):
    """t: (B, S1, S2, 1) float -> (B, S1, S2, d_model) positional encoding."""
    assert d_model % 2 == 0 and d_model >= 2
    B, S1, S2, one = t.shape
    assert one == 1
    M = B * S1 * S2

    # --- lane packing: pack G positions per row so W = G*d_model % 128 == 0 --
    if d_model % 128 == 0:
        G = 1
    else:
        G = 128 // math.gcd(d_model, 128)
        # only pack when it divides M (no padding, no post-kernel slice copy)
        if G * d_model > 2048 or M % G != 0:
            G = 1               # width == full last dim -> still a legal block
    W = G * d_model
    rows = M // G

    itemsize = jnp.dtype(out_dtype).itemsize
    sub = 16 if itemsize <= 2 else 8

    # --- row tile: <= 8 MiB per output buffer; grid >= 2 steps for megacore --
    tm = max(sub, (8 * 1024 * 1024 // (W * itemsize)) // sub * sub)
    if block_rows is not None:
        tm = max(sub, (int(block_rows) // sub) * sub)
    if rows > sub:
        tm = min(tm, _round_up(-(-rows // 2), sub))        # -> at least 2 grid steps
    else:
        tm = rows                                           # tiny problem: single block
    grid = pl.cdiv(rows, tm)                                # ragged last block is fine

    t_rows = t.reshape(rows, G).astype(jnp.float32)

    # --- grid-invariant resident table (computed once in the wrapper) --------
    f = jnp.arange(d_model, dtype=jnp.int32)
    freq = jnp.exp(((f // 2) * 2).astype(jnp.float32)
                   * jnp.float32(-math.log(10000.0) / d_model))
    freq = freq * jnp.float32(max_len)                      # fold max_len into freq
    phase = (f % 2).astype(jnp.float32) * jnp.float32(math.pi / 2.0)
    freq_w = jnp.tile(freq, G)                              # (W,)
    phase_w = jnp.tile(phase, G)                            # (W,)
    lane_grp = jnp.repeat(jnp.arange(G, dtype=jnp.int32), d_model)          # (W,)
    mfreq = jnp.where(lane_grp[None, :] == jnp.arange(G, dtype=jnp.int32)[:, None],
                      freq_w[None, :], jnp.float32(0.0))    # (G, W) lane-masked freqs
    tbl = jnp.concatenate([mfreq, phase_w[None, :]], axis=0)                # (G+1, W)

    out_rows = pl.pallas_call(
        functools.partial(_pe_kernel, groups=G),
        out_shape=jax.ShapeDtypeStruct((rows, W), out_dtype),
        grid_spec=pltpu.PrefetchScalarGridSpec(
            num_scalar_prefetch=0,
            grid=(grid,),
            in_specs=[
                pl.BlockSpec((G + 1, W), lambda i: (0, 0)),   # resident table
                pl.BlockSpec((tm, G), lambda i: (i, 0)),
            ],
            out_specs=pl.BlockSpec((tm, W), lambda i: (i, 0)),
        ),
        compiler_params=pltpu.CompilerParams(
            dimension_semantics=("parallel",),
            vmem_limit_bytes=32 * 1024 * 1024,
        ),
    )(tbl, t_rows)

    # rows*W == M*d_model and the packing is row-major consistent -> free reshape,
    # no padding and no slice copy.
    return out_rows.reshape(B, S1, S2, d_model)


def _reference(t, d_model: int, max_len: int = 5000):
    """Pure-JAX reference mirroring the PyTorch forward."""
    div_term = jnp.exp(
        jnp.arange(0, d_model, 2, dtype=jnp.float32)
        * (-math.log(10000.0) / d_model))
    position = t * max_len
    pe = jnp.zeros(t.shape[:3] + (d_model,), jnp.float32)
    pe = pe.at[..., 0::2].set(jnp.sin(position * div_term))
    pe = pe.at[..., 1::2].set(jnp.cos(position * div_term))
    return pe


if __name__ == "__main__":
    B, S1, S2 = 2, 8, 8
    d_model = 32
    max_len = 5000

    key = jax.random.PRNGKey(0)
    t = jax.random.uniform(key, (B, S1, S2, 1), dtype=jnp.float32)

    out = jax.block_until_ready(positional_encoding(t, d_model, max_len=max_len))
    assert out.shape == (B, S1, S2, d_model)
    assert out.dtype == jnp.float32

    ref = _reference(t, d_model, max_len=max_len)
    # cos(x) is computed as sin(x + pi/2); for angles up to max_len rad the f32
    # rounding of (x + pi/2) perturbs the argument by <= ~5e-4, the same order
    # as the module's own f32 position*freq rounding, so compare at 1e-3.
    err = float(jnp.max(jnp.abs(out - ref)))
    assert jnp.allclose(out, ref, atol=1e-3, rtol=1e-3), err

    print("KERNEL_OK")
</pallas_src>

<mosaic_0001>
module attributes {stable_mosaic.version = 11 : i64} {
  func.func @_pe_kernel(%arg0: i32, %arg1: memref<5x128xf32, #tpu.memory_space<vmem>>, %arg2: memref<16x4xf32, #tpu.memory_space<vmem>>, %arg3: memref<16x128xf32, #tpu.memory_space<vmem>>) attributes {dimension_semantics = [#tpu.dimension_semantics<parallel>], iteration_bounds = array<i64: 2>, scalar_prefetch = 0 : i64, scratch_operands = 0 : i64, tpu.core_type = #tpu.core_type<tc>, window_params = [{pipeline_mode = #tpu.pipeline_mode<synchronous>, transform_indices = @transform_0, window_bounds = array<i64: 5, 128>}, {transform_indices = @transform_1, window_bounds = array<i64: 16, 4>}, {transform_indices = @transform_2, window_bounds = array<i64: 16, 128>}]} {
    %c0 = arith.constant 0 : index
    %c0_0 = arith.constant 0 : index
    %0 = vector.load %arg2[%c0, %c0_0] : memref<16x4xf32, #tpu.memory_space<vmem>>, vector<16x4xf32>
    %1 = vector.extract_strided_slice %0 {offsets = [0, 0], sizes = [16, 1], strides = [1, 1]} : vector<16x4xf32> to vector<16x1xf32>
    %c0_1 = arith.constant 0 : index
    %c0_2 = arith.constant 0 : index
    %2 = vector.load %arg1[%c0_1, %c0_2] : memref<5x128xf32, #tpu.memory_space<vmem>>, vector<1x128xf32>
    %3 = vector.broadcast %1 : vector<16x1xf32> to vector<16x128xf32>
    %4 = vector.broadcast %2 : vector<1x128xf32> to vector<16x128xf32>
    %5 = arith.mulf %3, %4 : vector<16x128xf32>
    %6 = vector.extract_strided_slice %0 {offsets = [0, 1], sizes = [16, 1], strides = [1, 1]} : vector<16x4xf32> to vector<16x1xf32>
    %c1 = arith.constant 1 : index
    %c0_3 = arith.constant 0 : index
    %7 = vector.load %arg1[%c1, %c0_3] : memref<5x128xf32, #tpu.memory_space<vmem>>, vector<1x128xf32>
    %8 = vector.broadcast %6 : vector<16x1xf32> to vector<16x128xf32>
    %9 = vector.broadcast %7 : vector<1x128xf32> to vector<16x128xf32>
    %10 = arith.mulf %8, %9 : vector<16x128xf32>
    %11 = arith.addf %5, %10 : vector<16x128xf32>
    %12 = vector.extract_strided_slice %0 {offsets = [0, 2], sizes = [16, 1], strides = [1, 1]} : vector<16x4xf32> to vector<16x1xf32>
    %c2 = arith.constant 2 : index
    %c0_4 = arith.constant 0 : index
    %13 = vector.load %arg1[%c2, %c0_4] : memref<5x128xf32, #tpu.memory_space<vmem>>, vector<1x128xf32>
    %14 = vector.broadcast %12 : vector<16x1xf32> to vector<16x128xf32>
    %15 = vector.broadcast %13 : vector<1x128xf32> to vector<16x128xf32>
    %16 = arith.mulf %14, %15 : vector<16x128xf32>
    %17 = arith.addf %11, %16 : vector<16x128xf32>
    %18 = vector.extract_strided_slice %0 {offsets = [0, 3], sizes = [16, 1], strides = [1, 1]} : vector<16x4xf32> to vector<16x1xf32>
    %c3 = arith.constant 3 : index
    %c0_5 = arith.constant 0 : index
    %19 = vector.load %arg1[%c3, %c0_5] : memref<5x128xf32, #tpu.memory_space<vmem>>, vector<1x128xf32>
    %20 = vector.broadcast %18 : vector<16x1xf32> to vector<16x128xf32>
    %21 = vector.broadcast %19 : vector<1x128xf32> to vector<16x128xf32>
    %22 = arith.mulf %20, %21 : vector<16x128xf32>
    %23 = arith.addf %17, %22 : vector<16x128xf32>
    %c4 = arith.constant 4 : index
    %c0_6 = arith.constant 0 : index
    %24 = vector.load %arg1[%c4, %c0_6] : memref<5x128xf32, #tpu.memory_space<vmem>>, vector<1x128xf32>
    %25 = vector.broadcast %24 : vector<1x128xf32> to vector<16x128xf32>
    %26 = arith.addf %23, %25 : vector<16x128xf32>
    %27 = math.sin %26 : vector<16x128xf32>
    %c0_7 = arith.constant 0 : index
    %c0_8 = arith.constant 0 : index
    %28 = vector.load %arg3[%c0_7, %c0_8] : memref<16x128xf32, #tpu.memory_space<vmem>>, vector<16x128xf32>
    tpu.vector_store %arg3[%c0_7, %c0_8], %27 {strides = array<i32>} : memref<16x128xf32, #tpu.memory_space<vmem>>, vector<16x128xf32>,
    return
  }
  func.func @transform_0(%arg0: i32) -> (i32, i32) {
    %c0_i32 = arith.constant 0 : i32
    %c0_i32_0 = arith.constant 0 : i32
    %c0_i32_1 = arith.constant 0 : i32
    return %c0_i32, %c0_i32_0 : i32, i32
  }
  func.func @transform_1(%arg0: i32) -> (i32, i32) {
    %c0_i32 = arith.constant 0 : i32
    %c0_i32_0 = arith.constant 0 : i32
    return %arg0, %c0_i32 : i32, i32
  }
  func.func @transform_2(%arg0: i32) -> (i32, i32) {
    %c0_i32 = arith.constant 0 : i32
    %c0_i32_0 = arith.constant 0 : i32
    return %arg0, %c0_i32 : i32, i32
  }
}

</mosaic_0001>

<bundles_post_ra>
// kernel: tpu_custom_call.1
= control target key start
LH: loop header
LB: loop body
LE: loop exit
PB: predicated region body
PF: predicated region fallthrough
CT: control target
= control target key end

     0   :  { %7 = vsyncpa [#allocation3], 0  ;;  %s879_s0 = inlined_call_operand.vmem [shape: f32[5,128], index: 0, kind: input, shape index: {}]   ;;  %s880_s1 = inlined_call_operand.vmem [shape: f32[32,4], index: 1, kind: input, shape index: {}]   ;;  %s881_s2 = inlined_call_operand.hbm [shape: f32[32,128], index: 2, kind: output, shape index: {}]  }
   0x1   :  { %9 = vsyncpa [#allocation3 + $0x1], 0  ;;  %s697_s9 = smov 0   ;;  %s699_s10 = smov 0  }
   0x2   :  { %s701_s11 = smov 0   ;;  %s703_s12 = smov 0  }
   0x3 LB: > { %s718_s13 = sadd.s32 4294967295, %s667_s12   ;;  %s508_s14 = sadd.s32 4294967294, %s667_s12   ;;  %s667_s12 = sphi %s703_s12, %s887_s12   ;;  %s663_s11 = sphi %s701_s11, %s886_s11   ;;  %s659_s10 = sphi %s699_s10, %s885_s10   ;;  %s655_s9 = sphi %s697_s9, %s884_s9  }
   0x4   : > { %s722_s15 = sadd.s32 1, %s667_s12   ;;  %s69_s16 = sadd.s32 1, %s663_s11 }
   0x5   : > { %s66_s17 = ssub.s32 %s667_s12, %s722_s15  ;;  %p79_p0 = scmp.ne.s32.totalorder %s663_s11, %s659_s10 }
   0x6   : > { %p67_p1 = scmp.eq.s32.totalorder %s66_s17, 0  ;;  %p80_p2 = scmp.eq.s32.totalorder %s718_s13, 1 }
   0x7   : > { %p85_p3 = scmp.ne.s32.totalorder %s659_s10, %s655_s9  ;;  %p86_p4 = scmp.eq.s32.totalorder %s508_s14, 1 }
   0x8   : > { %s733_s18 = scalar_select %p67_p1, %s663_s11, %s69_s16  }
   0x9   : > { %p735_p5 = por %p80_p2, %p79_p0  ;;  %p739_p6 = por %p86_p4, %p85_p3 }
   0xa   : > { %p511_p7 = scmp.ge.s32.totalorder %s667_s12, 1  ;;  %p116_p8 = scmp.lt.s32.totalorder %s667_s12, 3 }
   0xc   : > { %p117_p9 = pnand %p511_p7, %p116_p8 }
   0xd   : > { %s513_s21 = sshll.u32 (!%p117_p9), %s718_s13, 1  ;;  %s135_s8 = sand.u32 (!%p117_p9), 1, %s659_s10  }
   0xe   : > { %120 = sbr.rel (%p117_p9) target bundleno = 273 (0x111), region = 28  ;;  %p139_p10 = scmp.lt.s32.totalorder (!%p117_p9), %s513_s21, 3 }
   0xf   : > { %s512_s14 = sshll.u32 (!%p117_p9), %s135_s8, 4  ;;  %s533_s17 = sshll.u32 (!%p117_p9), %s718_s13, 8 }
  0x10   : > { %s137_s16 = scalar_lea.vmem (!%p117_p9), [#allocation2], %s512_s14  ;;  %s832_s24 = scalar_lea.hbm (!%p117_p9), %s881_s2, %s533_s17 }
  0x11   : > { %s839_s13 = scalar_lea.sflag (!%p117_p9), [#allocation3], %s135_s8  ;;  %s679_s26 = smov (!%p117_p9), [#allocation2]  }
  0x12   : > { %s611_s27 = sshll.u32 (!%p117_p9), %s679_s26, 4  ;;  %s612_s27 = int_to_ptr.vmem [resolvable:$false] %s611_s27 }
  0x13   : > { %v669_v0 = vmov 1   ;;  %v670_v1 = vmov 0   ;;  %s889_s21 = smov (!%p139_p10, %s513_s21), 3  ;;  %v671_v4 = vmov 2   ;;  %v672_v5 = vmov 3   ;;  %s613_s28 = scalar_lea.vmem %s612_s27, 512 }
  0x14   : > { %594 = vset.pattern.permute.xlu1 %v669_v0  ;;  %593 = vset.pattern.permute.xlu0 %v670_v1  ;;  %s514_s22 = sshll.u32 %s889_s21, 3  ;;  %v516_v10 = vld [vmem:[%s879_s0 + $0x1] ss:$0 sm:$0xff]  ;;  %v515_v11 = vld [vmem:[%s879_s0] ss:$0 sm:$0xff]  ;;  %s446_s21 = sshll.u32 %s137_s16, 4  ;;  %s834_s21 = int_to_ptr.vmem [resolvable:$true] %s446_s21 }
  0x15   : > { %s142_s25 = scalar_lea.vmem %s880_s1, %s514_s22  ;;  %v517_v12 = vld [vmem:[%s879_s0 + $0x2] ss:$0 sm:$0xff]  ;;  %v518_v21 = vld [vmem:[%s879_s0 + $0x3] ss:$0 sm:$0xff]  ;;  %v519_v30 = vld [vmem:[%s879_s0 + $0x4] ss:$0 sm:$0xff]  ;;  %p614_p0 = scmp.lt.s32.totalorder %s834_s21, %s612_s27 }
  0x16   : > { %v145_v2 = vld [vmem:[%s142_s25] sm:$0xff]  ;;  %v146_v3 = vld [vmem:[%s142_s25 + $0x8] sm:$0xff]  ;;  %v673_v55 = vmov 683565275   ;;  %v674_v59 = vmov 2475754826  }
  0x17   : > { %166 = vperm.xlu1 %594, %v145_v2   ;;  %150 = vperm.xlu0 %593, %v145_v2   ;;  %v675_v61 = vmov 2131351028   ;;  %v676_v63 = vmov 2102212464   ;;  %v677_v1 = vmov 920167782  }
  0x18   : > { %s607_s25 = scalar_lea.vmem %s834_s21, 256 }
  0x19   : > { %p608_p11 = scmp.ne.s32.totalorder %s834_s21, %s607_s25  ;;  %p615_p1 = scmp.lt.s32.totalorder %s613_s28, %s607_s25 }
  0x1b   : > { %170 = vperm.xlu1 %594, %v146_v3   ;;  %155 = vperm.xlu0 %593, %v146_v3   ;;  %p609_p12 = pnand %p608_p11, %p735_p5  ;;  %p616_p2 = por %p615_p1, %p614_p0 }
  0x1d   : > { %p610_p13 = pneg %p609_p12 }
  0x1f   : > { %596 = vset.pattern.permute.xlu1 %v671_v4  ;;  %595 = vset.pattern.permute.xlu0 %v671_v4  ;;  %p617_p3 = pnand %p616_p2, %p610_p13 }
  0x20   : > { %187 = vperm.xlu1 %596, %v146_v3   ;;  %183 = vperm.xlu0 %595, %v145_v2  }
  0x24   : > { %597 = vset.pattern.permute.xlu1 %v672_v5  ;;  %598 = vset.pattern.permute.xlu0 %v672_v5 }
  0x25   : > { %200 = vperm.xlu1 %597, %v145_v2   ;;  %204 = vperm.xlu0 %598, %v146_v3  }
  0x92   : > { %v167_v6 = vpop.permute.xlu1 %166  ;;  %v151_v7 = vpop.permute.xlu0 %150 }
  0x93   : > { %v177_v13 = vmul.f32 %v516_v10, %v167_v6  ;;  %v162_v14 = vmul.f32 %v515_v11, %v151_v7 }
  0x95   : > { %v179_v22 = vadd.f32 %v177_v13, %v162_v14 }
  0x96   : > { %v171_v8 = vpop.permute.xlu1 %170  ;;  %v156_v9 = vpop.permute.xlu0 %155 }
  0x97   : > { %v178_v15 = vmul.f32 %v516_v10, %v171_v8  ;;  %v163_v16 = vmul.f32 %v515_v11, %v156_v9  ;;  %v678_v8 = vmov 1326507024  }
  0x99   : > { %v180_v23 = vadd.f32 %v178_v15, %v163_v16 }
  0x9b   : > { %v188_v17 = vpop.permute.xlu1 %187  ;;  %v184_v18 = vpop.permute.xlu0 %183 }
  0x9c   : > { %v195_v19 = vmul.f32 %v517_v12, %v188_v17  ;;  %v194_v20 = vmul.f32 %v517_v12, %v184_v18 }
  0x9e   : > { %v197_v26 = vadd.f32 %v195_v19, %v180_v23  ;;  %v196_v27 = vadd.f32 %v194_v20, %v179_v22 }
  0xa0   : > { %v201_v24 = vpop.permute.xlu1 %200  ;;  %v205_v25 = vpop.permute.xlu0 %204 }
  0xa1   : > { %v211_v28 = vmul.f32 %v518_v21, %v201_v24  ;;  %v212_v29 = vmul.f32 %v518_v21, %v205_v25 }
  0xa3   : > { %v213_v31 = vadd.f32 %v211_v28, %v196_v27  ;;  %v214_v32 = vadd.f32 %v212_v29, %v197_v26 }
  0xa5   : > { %v764_v33 = vadd.f32 %v519_v30, %v213_v31  ;;  %v766_v34 = vadd.f32 %v519_v30, %v214_v32 }
  0xa7   : > { %v222_v35 = vand.u32 2147483647, %v764_v33  ;;  %v225_v36 = vand.u32 2139095040, %v764_v33  ;;  %v329_v37 = vand.u32 2139095040, %v766_v34  ;;  %v326_v40 = vand.u32 2147483647, %v766_v34 }
  0xa8   : > { %vm224_vm14 = vcmp.lt.s32.totalorder %v764_v33, 0 }
  0xa9   : > { %v226_v38 = vshrl.u32 %v225_v36, 23  ;;  %v229_v39 = vand.u32 8388607, %v222_v35  ;;  %v330_v41 = vshrl.u32 %v329_v37, 23  ;;  %v776_v46 = vand.u32 8388607, %v326_v40 }
  0xaa   : > { %vm223_vm15 = vcmp.le.f32.partialorder %v222_v35, 0.7853982 }
  0xab   : > { %v520_v42 = vadd.s32 4294967169, %v226_v38  ;;  %v524_v43 = vadd.s32 4294967169, %v330_v41  ;;  %v230_v45 = vor.u32 8388608, %v229_v39  ;;  %v334_v53 = vor.u32 8388608, %v776_v46 }
  0xad   : > { %v232_v44 = vadd.s32 1, %v520_v42  ;;  %v336_v47 = vadd.s32 1, %v524_v43  ;;  %v778_v52 = vshll.u32 %v230_v45, 8 }
  0xaf   : > { %vm233_vm0 = vcmp.gt.s32.totalorder %v232_v44, 0  ;;  %vm337_vm1 = vcmp.gt.s32.totalorder %v336_v47, 0 }
  0xb0   : > { %v234_v48 = vsel %vm233_vm0, %v232_v44, 0  ;;  %v338_v51 = vsel %vm337_vm1, %v336_v47, 0  ;;  %v374_v47 = vshll.u32 %v334_v53, 8  ;;  %vm328_vm0 = vcmp.lt.s32.totalorder %v766_v34, 0 }
  0xb1   : > { %v235_v49 = vshrl.u32 %v234_v48, 5  ;;  %v236_v50 = vand.u32 31, %v234_v48  ;;  %v781_v57 = vshrl.u32 %v338_v51, 5  ;;  %v340_v58 = vand.u32 31, %v338_v51 }
  0xb2   : > { %vm327_vm1 = vcmp.le.f32.partialorder %v326_v40, 0.7853982 }
  0xb3   : > { %v237_v54 = vsub.s32 32, %v236_v50  ;;  %v239_v56 = vshll.u32 %v673_v55, %v236_v50  ;;  %v242_v60 = vshll.u32 %v674_v59, %v236_v50  ;;  %v245_v62 = vshll.u32 %v675_v61, %v236_v50 }
  0xb4   : > { %v248_v0 = vshll.u32 %v676_v63, %v236_v50  ;;  %v251_v2 = vshll.u32 %v677_v1, %v236_v50  ;;  %vm254_vm2 = vcmp.lt.s32.totalorder %v235_v49, 1  ;;  %vm255_vm3 = vcmp.lt.s32.totalorder %v235_v49, 2 }
  0xb5   : > { %v240_v3 = vshrl.u32 %v674_v59, %v237_v54  ;;  %v243_v4 = vshrl.u32 %v675_v61, %v237_v54  ;;  %v246_v5 = vshrl.u32 %v676_v63, %v237_v54  ;;  %v238_v6 = vshrl.u32 %v673_v55, %v237_v54 }
  0xb6   : > { %v249_v7 = vshrl.u32 %v677_v1, %v237_v54  ;;  %v252_v9 = vshrl.u32 %v678_v8, %v237_v54  ;;  %v341_v13 = vsub.s32 32, %v340_v58  ;;  %vm256_vm4 = vcmp.lt.s32.totalorder %v235_v49, 3 }
  0xb7   : > { %v241_v10 = vor.u32 %v240_v3, %v239_v56  ;;  %v244_v11 = vor.u32 %v243_v4, %v242_v60  ;;  %v247_v12 = vor.u32 %v246_v5, %v245_v62  ;;  %vm257_vm5 = vcmp.lt.s32.totalorder %v235_v49, 4 }
  0xb8   : > { %v250_v14 = vor.u32 %v249_v7, %v248_v0  ;;  %v253_v15 = vor.u32 %v252_v9, %v251_v2  ;;  %v343_v23 = vshll.u32 %v673_v55, %v340_v58  ;;  %v344_v26 = vshrl.u32 %v674_v59, %v341_v13 }
  0xb9   : > { %v258_v16 = vsel %vm254_vm2, %v238_v6, %v241_v10  ;;  %v259_v17 = vsel %vm257_vm5, %v247_v12, 2102212464  ;;  %v262_v18 = vsel %vm254_vm2, %v241_v10, %v244_v11  ;;  %v266_v19 = vsel %vm254_vm2, %v244_v11, %v247_v12 }
  0xba   : > { %v260_v20 = vsel %vm256_vm4, %v244_v11, %v259_v17  ;;  %v263_v21 = vsel %vm257_vm5, %v250_v14, 920167782  ;;  %v267_v22 = vsel %vm257_vm5, %v253_v15, 1326507024  ;;  %v346_v27 = vshll.u32 %v674_v59, %v340_v58 }
  0xbb   : > { %v264_v24 = vsel %vm256_vm4, %v247_v12, %v263_v21  ;;  %v268_v25 = vsel %vm256_vm4, %v250_v14, %v267_v22  ;;  %v261_v28 = vsel %vm255_vm3, %v258_v16, %v260_v20  ;;  %v347_v31 = vshrl.u32 %v675_v61, %v341_v13 }
  0xbc   : > { %v265_v29 = vsel %vm255_vm3, %v262_v18, %v264_v24  ;;  %v269_v30 = vsel %vm255_vm3, %v266_v19, %v268_v25  ;;  %v345_v39 = vor.u32 %v344_v26, %v343_v23  ;;  %v349_v42 = vshll.u32 %v675_v61, %v340_v58 }
  0xbd   : > { %v790_v32 = vmul.u32.u64.low %v778_v52, %v269_v30  ;;  %v791_v36 = vmul.u32.u64.high %v778_v52, %v269_v30, %v790_v32  ;;  %v794_v37 = vmul.u32.u64.low %v778_v52, %v265_v29  ;;  %v795_v38 = vmul.u32.u64.high %v778_v52, %v265_v29, %v794_v37 }
  0xbe   : > { %v348_v41 = vor.u32 %v347_v31, %v346_v27  ;;  %v350_v43 = vshrl.u32 %v676_v63, %v341_v13  ;;  %v352_v44 = vshll.u32 %v676_v63, %v340_v58  ;;  %v353_v45 = vshrl.u32 %v677_v1, %v341_v13 }
  0xbf   : > { %v356_v46 = vshrl.u32 %v678_v8, %v341_v13  ;;  %v277_v48 = vmul.u32 %v778_v52, %v261_v28  ;;  %v342_v49 = vshrl.u32 %v673_v55, %v341_v13  ;;  %v355_v51 = vshll.u32 %v677_v1, %v340_v58 }
  0xc0   : > { %v351_v50 = vor.u32 %v350_v43, %v349_v42  ;;  %vm279_vm6 = vc.u32 %v791_v36, %v794_v37  ;;  %v280_v54 = vadd.s32 1, %v795_v38  ;;  %v354_v56 = vor.u32 %v353_v45, %v352_v44 }
  0xc1   : > { %vm358_vm7 = vcmp.lt.s32.totalorder %v781_v57, 1  ;;  %v357_v59 = vor.u32 %v356_v46, %v355_v51  ;;  %vm360_vm8 = vcmp.lt.s32.totalorder %v781_v57, 3  ;;  %vm361_vm9 = vcmp.lt.s32.totalorder %v781_v57, 4 }
  0xc2   : > { %v366_v60 = vsel %vm358_vm7, %v345_v39, %v348_v41  ;;  %v281_v53 = vsel %vm279_vm6, %v280_v54, %v795_v38  ;;  %v363_v61 = vsel %vm361_vm9, %v351_v50, 2102212464  ;;  %v367_v52 = vsel %vm361_vm9, %v354_v56, 920167782 }
  0xc3   : > { %v370_v55 = vsel %vm358_vm7, %v348_v41, %v351_v50  ;;  %v282_v62 = vadd.s32 %v281_v53, %v277_v48  ;;  %vm359_vm10 = vcmp.lt.s32.totalorder %v781_v57, 2  ;;  %v368_v58 = vsel %vm360_vm8, %v351_v50, %v367_v52 }
  0xc4   : > { %v371_v63 = vsel %vm361_vm9, %v357_v59, 1326507024  ;;  %v362_v0 = vsel %vm358_vm7, %v342_v49, %v345_v39  ;;  %v364_v1 = vsel %vm360_vm8, %v348_v41, %v363_v61  ;;  %v369_v2 = vsel %vm359_vm10, %v366_v60, %v368_v58 }
  0xc5   : > { %v372_v3 = vsel %vm360_vm8, %v354_v56, %v371_v63  ;;  %v283_v4 = vadd.s32 536870912, %v282_v62  ;;  %v805_v6 = vmul.u32.u64.low %v374_v47, %v369_v2  ;;  %v806_v7 = vmul.u32.u64.high %v374_v47, %v369_v2, %v805_v6 }
  0xc6   : > { %v373_v5 = vsel %vm359_vm10, %v370_v55, %v372_v3  ;;  %v365_v11 = vsel %vm359_vm10, %v362_v0, %v364_v1  ;;  %v278_v27 = vadd.s32 %v794_v37, %v791_v36  ;;  %vm314_vm5 = vweird.f32 %v764_v33 }
  0xc7   : > { %v808_v8 = vmul.u32.u64.low %v374_v47, %v373_v5  ;;  %v809_v9 = vmul.u32.u64.high %v374_v47, %v373_v5, %v808_v8  ;;  %v284_v10 = vshrl.u32 %v283_v4, 30  ;;  %v384_v13 = vadd.s32 1, %v806_v7 }
  0xc8   : > { %v381_v57 = vmul.u32 %v374_v47, %v365_v11  ;;  %vm418_vm9 = vweird.f32 %v766_v34 }
  0xc9   : > { %v285_v12 = vshll.u32 %v284_v10, 30  ;;  %vm383_vm11 = vc.u32 %v809_v9, %v805_v6  ;;  %v382_v48 = vadd.s32 %v805_v6, %v809_v9  ;;  %v308_v59 = vsub.s32 4, %v284_v10 }
  0xca   : > { %v385_v15 = vsel %vm383_vm11, %v384_v13, %v806_v7 }
  0xcb   : > { %v286_v14 = vsub.s32 %v282_v62, %v285_v12  ;;  %v386_v16 = vadd.s32 %v385_v15, %v381_v57  ;;  %v309_v62 = vsel %vm224_vm14, %v308_v59, %v284_v10 }
  0xcc   : > { %v311_v1 = vsel %vm223_vm15, 0, %v309_v62 }
  0xcd   : > { %v288_v17 = vsub.s32 0, %v286_v14  ;;  %v387_v18 = vadd.s32 536870912, %v386_v16  ;;  %v315_v4 = vadd.s32 3, %v311_v1 }
  0xcf   : > { %v521_v19 = vmin.u32 %v288_v17, %v286_v14  ;;  %v388_v20 = vshrl.u32 %v387_v18, 30  ;;  %v316_v7 = vand.u32 3, %v315_v4 }
  0xd1   : > { %v290_v21 = vclz %v521_v19  ;;  %v389_v22 = vshll.u32 %v388_v20, 30  ;;  %v412_v3 = vsub.s32 4, %v388_v20  ;;  %vm321_vm2 = vcmp.eq.s32.totalorder %v316_v7, 2 }
  0xd2   : > { %vm318_vm3 = vcmp.eq.s32.totalorder %v316_v7, 0  ;;  %vm317_vm4 = vcmp.lt.s32.totalorder %v316_v7, 2 }
  0xd3   : > { %v522_v23 = vadd.s32 4294967294, %v290_v21  ;;  %v390_v24 = vsub.s32 %v386_v16, %v389_v22  ;;  %v413_v6 = vsel %vm328_vm0, %v412_v3, %v388_v20 }
  0xd4   : > { %v415_v9 = vsel %vm327_vm1, 0, %v413_v6 }
  0xd5   : > { %vm523_vm12 = vcmp.lt.s32.totalorder %v522_v23, 0  ;;  %v392_v26 = vsub.s32 0, %v390_v24  ;;  %v419_v13 = vadd.s32 3, %v415_v9 }
  0xd6   : > { %v293_v25 = vsel %vm523_vm12, 0, %v522_v23 }
  0xd7   : > { %v294_v28 = vsub.s32 32, %v293_v25  ;;  %v298_v29 = vsub.s32 4294967266, %v293_v25  ;;  %v525_v30 = vmin.u32 %v392_v26, %v390_v24  ;;  %v295_v31 = vshll.u32 %v286_v14, %v293_v25 }
  0xd8   : > { %v420_v16 = vand.u32 3, %v419_v13 }
  0xd9   : > { %v296_v32 = vshrl.u32 %v278_v27, %v294_v28  ;;  %v299_v38 = vadd.s32 127, %v298_v29  ;;  %v394_v39 = vclz %v525_v30 }
  0xda   : > { %vm425_vm6 = vcmp.eq.s32.totalorder %v420_v16, 2  ;;  %vm422_vm7 = vcmp.eq.s32.totalorder %v420_v16, 0  ;;  %vm421_vm8 = vcmp.lt.s32.totalorder %v420_v16, 2 }
  0xdb   : > { %v297_v41 = vor.u32 %v296_v32, %v295_v31  ;;  %v300_v42 = vshll.u32 %v299_v38, 23  ;;  %v526_v43 = vadd.s32 4294967294, %v394_v39 }
  0xdd   : > { %v301_v44 = vor.u32 4788187, %v300_v42  ;;  %vm527_vm13 = vcmp.lt.s32.totalorder %v526_v43, 0  ;;  %v304_v46 = vcvt.s32.f32 %v297_v41 }
  0xde   : > { %v397_v47 = vsel %vm527_vm13, 0, %v526_v43 }
  0xdf   : > { %v302_v45 = vand.u32 2147483647, %v301_v44  ;;  %v398_v49 = vsub.s32 32, %v397_v47  ;;  %v402_v50 = vsub.s32 4294967266, %v397_v47  ;;  %v399_v37 = vshll.u32 %v390_v24, %v397_v47 }
  0xe1   : > { %v305_v36 = vmul.f32 %v304_v46, %v302_v45  ;;  %v400_v51 = vshrl.u32 %v382_v48, %v398_v49  ;;  %v403_v54 = vadd.s32 127, %v402_v50 }
  0xe3   : > { %v306_v56 = vxor.u32 2147483648, %v305_v36  ;;  %v401_v60 = vor.u32 %v400_v51, %v399_v37  ;;  %v404_v53 = vshll.u32 %v403_v54, 23 }
  0xe5   : > { %v307_v61 = vsel %vm224_vm14, %v306_v56, %v305_v36  ;;  %v405_v55 = vor.u32 4788187, %v404_v53  ;;  %v408_v63 = vcvt.s32.f32 %v401_v60 }
  0xe6   : > { %v310_v52 = vsel %vm223_vm15, %v764_v33, %v307_v61 }
  0xe7   : > { %599 = vcosq.f32 %v310_v52  ;;  %v406_v58 = vand.u32 2147483647, %v405_v55 }
  0xe8   : > { %601 = vsinq.f32 %v310_v52 }
  0xe9   : > { %v409_v0 = vmul.f32 %v408_v63, %v406_v58 }
  0xeb   : > { %v410_v2 = vxor.u32 2147483648, %v409_v0 }
  0xed   : > { %v411_v35 = vsel %vm328_vm0, %v410_v2, %v409_v0 }
  0xee   : > { %v414_v5 = vsel %vm327_vm1, %v766_v34, %v411_v35 }
  0xef   : > { %603 = vcosq.f32 %v414_v5 }
  0xf0   : > { %605 = vsinq.f32 %v414_v5 }
  0xf4   : > { %v600_v8 = vpop.eup %599 }
  0xf5   : > { %v602_v10 = vpop.eup %601  ;;  %v322_v11 = vxor.u32 2147483648, %v600_v8 }
  0xf6   : > { %v319_v12 = vxor.u32 2147483648, %v602_v10 }
  0xf7   : > { %v323_v40 = vsel %vm321_vm2, %v322_v11, %v602_v10 }
  0xf8   : > { %v320_v57 = vsel %vm318_vm3, %v600_v8, %v319_v12 }
  0xf9   : > { %v324_v14 = vsel %vm317_vm4, %v320_v57, %v323_v40 }
  0xfa   : > { %v325_v15 = vsel %vm314_vm5, nan, %v324_v14 }
  0xfb   : > { %430 = vst [vmem:[%s137_s16] sm:$0xff] %v325_v15 }
  0xfc   : > { %v604_v17 = vpop.eup %603 }
  0xfd   : > { %v606_v18 = vpop.eup %605  ;;  %v426_v19 = vxor.u32 2147483648, %v604_v17 }
  0xfe   : > { %v423_v20 = vxor.u32 2147483648, %v606_v18 }
  0xff   : > { %v427_v21 = vsel %vm425_vm6, %v426_v19, %v606_v18 }
 0x100   : > { %v424_v22 = vsel %vm422_vm7, %v604_v17, %v423_v20 }
 0x101   : > { %v428_v33 = vsel %vm421_vm8, %v424_v22, %v427_v21 }
 0x102   : > { %v429_v23 = vsel %vm418_vm9, nan, %v428_v33 }
 0x103   : > { %431 = vst [vmem:[%s137_s16 + $0x8] sm:$0xff] %v429_v23 }
 0x104   : > { %620 = shalt.err (!%p617_p3)
}
 0x105   : > { %s621_s29 = scalar_lea.hbm %s832_s24, 256  ;;  %s625_s4 = scalar_lea.hbm %s881_s2, 512 }
 0x106   : > { %p622_p4 = scmp.ne.s32.totalorder %s832_s24, %s621_s29  ;;  %p626_p9 = scmp.lt.s32.totalorder %s832_s24, %s881_s2 }
 0x107   : > { %p627_p10 = scmp.lt.s32.totalorder %s625_s4, %s621_s29 }
 0x108   : > { %p623_p7 = pnand %p622_p4, %p735_p5 }
 0x109   : > { %p628_p11 = por %p627_p10, %p626_p9 }
 0x10a   : > { %p624_p8 = pneg %p623_p7 }
 0x10c   : > { %p629_p12 = pnand %p628_p11, %p624_p8 }
 0x10e   : > { %632 = shalt.err (!%p629_p12)
}
 0x10f   : > { %s680_s7 = smov 128   ;;  %s681_s8 = smov 8  }
 0x110   : > { %542 = dma.vmem_to_hbm [thread:$0]  (%p735_p5), %s834_s21, 256, %s832_s24, %s839_s13, %s680_s7, %s680_s7, %s681_s8  }
 0x111 PF: > { %p548_p13 = scmp.ge.s32.totalorder %s667_s12, 2  ;;  %s461_s14 = sand.u32 1, %s655_s9  }
 0x112   : > { %s462_s16 = scalar_lea.sflag [#allocation3], %s461_s14 }
 0x113   : > { %p545_p0 = pnand %p548_p13, %p739_p6 }
 0x115   : > { %p546_p1 = pneg %p545_p0 }
 0x117   : > { %650 = dma.done.wait (%p546_p1), %s462_s16, 256  }
 0x118   : > { %652 = vsyncadd (%p546_p1), %s462_s16, 4294967040  ;;  %p12_p2 = scmp.ge.s32.totalorder %s722_s15, 4   ;;  %s884_s9 = smov %s659_s10 }
 0x119   : > { %s885_s10 = smov %s663_s11  ;;  %s886_s11 = smov %s733_s18 }
 0x11a   : > { %s887_s12 = smov %s722_s15  ;;  %14 = sbr.rel (!%p12_p2) target bundleno = 3 (0x3), region = 63 }
 0x11f   :  { %467 = vsyncpa [#allocation3], 1 }
 0x120   :  { %469 = vsyncpa [#allocation3 + $0x1], 1 }

</bundles_post_ra>
